<compile_context>
chip_gen: v7x
topology: tpu7x:2x2x1
jax: 0.10.0
libtpu: 0.0.40
codegen_flags: <defaults>
</compile_context>

<pallas_src>
import functools

import jax
import jax.numpy as jnp
from jax import lax
from jax.experimental import pallas as pl
from jax.experimental.pallas import tpu as pltpu


def _masked_nll_kernel(pred_ref, tgt_ref, msk_ref, num_out, den_out,
                       num_acc, den_acc, *, tiles_per_split, row_tile, n_rows):
    c = pl.program_id(0)          # row-range split ("parallel" on multi-TC chips)
    i = pl.program_id(1)          # tile index within the split ("arbitrary")

    @pl.when(i == 0)
    def _init():
        num_acc[...] = jnp.zeros_like(num_acc)
        den_acc[...] = jnp.zeros_like(den_acc)

    row_start = (c * tiles_per_split + i) * row_tile
    local_row = lax.broadcasted_iota(jnp.int32, (row_tile, 1), 0)
    row_valid = (row_start + local_row) < n_rows              # (row_tile, 1)

    # Zero ragged-tail / duplicated-tile rows *before* they touch the
    # accumulators: the DMA'd data there is undefined and may contain NaN/Inf.
    pred = jnp.where(row_valid, pred_ref[...].astype(jnp.float32), 0.0)
    msk = jnp.where(row_valid, msk_ref[...], 0.0)              # (row_tile, G)
    tgt = tgt_ref[...]                                         # (row_tile, G)

    col = lax.broadcasted_iota(jnp.int32, pred.shape, 1)       # (row_tile, CL)

    # "Selected mask" field: msk[r, g] at lane tgt[r, g], else 0.  Pure VPU
    # compare/select/add per step; no per-step cross-lane reduction.
    sel = jnp.zeros(pred.shape, jnp.float32)
    n_groups = tgt.shape[1]
    for g in range(n_groups):
        sel = sel + jnp.where(col == tgt[:, g:g + 1], msk[:, g:g + 1], 0.0)

    num_acc[...] += pred * sel                                 # elementwise only
    den_acc[...] += msk

    @pl.when(i == pl.num_programs(1) - 1)
    def _epilogue():
        # Single deferred reduction per split, then scalar partial outputs.
        num_out[...] = jnp.reshape(jnp.sum(num_acc[...]), (1, 1, 1))
        den_out[...] = jnp.reshape(jnp.sum(den_acc[...]), (1, 1, 1))


def _round_up(x, m):
    return ((x + m - 1) // m) * m


def _choose_group(n_rows_flat, n_classes, max_group=16):
    """How many consecutive rows get folded into the 128-wide lane axis."""
    if n_classes >= 128:
        return 1
    g = min(128 // n_classes, max_group)
    while g > 1 and n_rows_flat % g:
        g -= 1
    return g


def _vmem_capacity_bytes():
    # v7x has 64 MiB of VMEM per TensorCore; v5e/v6e have 128 MiB.
    try:
        return int(getattr(pltpu.get_tpu_info(), "vmem_capacity_bytes"))
    except Exception:
        return 64 * 1024 * 1024        # conservative (v7x) fallback


@functools.partial(jax.jit, static_argnames=("row_tile", "num_row_splits"))
def masked_nll_loss(predict, target, mask, *, row_tile=None, num_row_splits=2):
    """predict: (N, C) log-probs; target: (N,) ints; mask: (B, S) with B*S == N."""
    n_flat, n_classes = predict.shape
    target = target.astype(jnp.int32).reshape(n_flat)
    mask = mask.astype(jnp.float32).reshape(n_flat)

    # ---- lane packing: fold G rows into the (fast) lane axis when C < 128 ----
    group = _choose_group(n_flat, n_classes)
    n_rows = n_flat // group
    c_lanes = group * n_classes
    pred_p = predict.reshape(n_rows, c_lanes)          # row-major -> free reshape
    # lane index of each original row's target class inside its packed row
    tgt_p = (target
             + (jnp.arange(n_flat, dtype=jnp.int32) % group) * n_classes
             ).reshape(n_rows, group)
    msk_p = mask.reshape(n_rows, group)

    # ---- tile sizing against a VMEM budget that is safe on all generations ----
    itemsize = jnp.dtype(predict.dtype).itemsize
    sub = max(8, 32 // max(itemsize, 1))               # 8 (f32) / 16 (bf16) rows
    cap = _vmem_capacity_bytes()
    vmem_limit = min(cap * 3 // 4, 96 * 1024 * 1024)   # leave physical headroom
    budget = vmem_limit * 3 // 4
    lanes_pad = _round_up(c_lanes, 128)
    bytes_per_row = (2 * lanes_pad * itemsize          # predict block, 2x buffered
                     + lanes_pad * 4                   # f32 numerator accumulator
                     + 2 * 2 * 128 * 4                 # target + mask blocks, 2x buf
                     + 128 * 4)                        # denominator accumulator
    if row_tile is None:
        row_tile = budget // bytes_per_row
        row_tile = min(row_tile, 4096,
                       _round_up(pl.cdiv(n_rows, num_row_splits), sub))
    row_tile = max(sub, (int(row_tile) // sub) * sub)

    num_tiles = pl.cdiv(n_rows, row_tile)
    tiles_per_split = pl.cdiv(num_tiles, num_row_splits)
    grid = (num_row_splits, tiles_per_split)

    def block_index(c, i):
        # Clamp so duplicated tiles of an uneven split re-read a valid block;
        # their rows are zeroed in-kernel via the row iota vs n_rows.
        return (jnp.minimum(c * tiles_per_split + i, num_tiles - 1), 0)

    kernel = functools.partial(_masked_nll_kernel,
                               tiles_per_split=tiles_per_split,
                               row_tile=row_tile,
                               n_rows=n_rows)

    num_parts, den_parts = pl.pallas_call(
        kernel,
        out_shape=(jax.ShapeDtypeStruct((num_row_splits, 1, 1), jnp.float32),
                   jax.ShapeDtypeStruct((num_row_splits, 1, 1), jnp.float32)),
        grid_spec=pltpu.PrefetchScalarGridSpec(
            num_scalar_prefetch=0,
            grid=grid,
            in_specs=[
                pl.BlockSpec((row_tile, c_lanes), block_index),
                pl.BlockSpec((row_tile, group), block_index),
                pl.BlockSpec((row_tile, group), block_index),
            ],
            out_specs=(
                pl.BlockSpec((1, 1, 1), lambda c, i: (c, 0, 0)),
                pl.BlockSpec((1, 1, 1), lambda c, i: (c, 0, 0)),
            ),
            scratch_shapes=[
                pltpu.VMEM((row_tile, c_lanes), jnp.float32),   # numerator acc
                pltpu.VMEM((row_tile, group), jnp.float32),     # denominator acc
            ],
        ),
        compiler_params=pltpu.CompilerParams(
            dimension_semantics=("parallel", "arbitrary"),
            vmem_limit_bytes=int(vmem_limit),
        ),
    )(pred_p, tgt_p, msk_p)

    # Combine per-split partials; divide once (NaN/Inf if sum(mask)==0, which
    # matches the PyTorch reference behaviour).
    return -jnp.sum(num_parts) / jnp.sum(den_parts)


def _reference_masked_nll(predict, target, mask):
    mask_ = mask.reshape(-1, 1).astype(jnp.float32)
    pred = predict.astype(jnp.float32)
    picked = jnp.take_along_axis(
        pred * mask_, target.reshape(-1, 1).astype(jnp.int32), axis=1)
    return -jnp.sum(picked) / jnp.sum(mask.astype(jnp.float32))


if __name__ == "__main__":
    key = jax.random.PRNGKey(0)

    def make_case(case_key, batch, seq, n_classes, dtype):
        k1, k2, k3 = jax.random.split(case_key, 3)
        n = batch * seq
        logits = jax.random.normal(k1, (n, n_classes), dtype=jnp.float32)
        predict = jax.nn.log_softmax(logits, axis=-1).astype(dtype)
        target = jax.random.randint(k2, (n,), 0, n_classes, dtype=jnp.int32)
        mask = (jax.random.uniform(k3, (batch, seq)) > 0.25).astype(jnp.float32)
        return predict, target, mask

    cases = [
        # (batch, seq, num_classes, dtype, tol)
        (2, 8, 32, jnp.float32, 1e-5),    # C<128: exact lane packing (G=4 -> 128 lanes)
        (3, 7, 10, jnp.float32, 1e-5),    # C<128: partial packing (G=7 -> 70 lanes)
        (2, 5, 200, jnp.float32, 1e-5),   # C>=128: unpacked, ragged tail + 2-way split
        (2, 8, 32, jnp.bfloat16, 1e-4),   # bf16 activations kept bf16 in HBM
    ]
    for idx, (b, s, c, dt, tol) in enumerate(cases):
        key, case_key = jax.random.split(key)
        predict, target, mask = make_case(case_key, b, s, c, dt)
        loss = jax.block_until_ready(masked_nll_loss(predict, target, mask))
        ref = jax.block_until_ready(_reference_masked_nll(predict, target, mask))
        assert jnp.allclose(loss, ref, rtol=tol, atol=tol), (idx, loss, ref)

    print("KERNEL_OK")
</pallas_src>

<mosaic_0001>
module attributes {stable_mosaic.version = 11 : i64} {
  func.func @_masked_nll_kernel(%arg0: i32, %arg1: i32, %arg2: memref<8x128xf32, #tpu.memory_space<vmem>>, %arg3: memref<8x4xi32, #tpu.memory_space<vmem>>, %arg4: memref<8x4xf32, #tpu.memory_space<vmem>>, %arg5: memref<1x1x1xf32, #tpu.memory_space<vmem>>, %arg6: memref<1x1x1xf32, #tpu.memory_space<vmem>>, %arg7: memref<8x128xf32, #tpu.memory_space<vmem>>, %arg8: memref<8x4xf32, #tpu.memory_space<vmem>>) attributes {dimension_semantics = [#tpu.dimension_semantics<parallel>, #tpu.dimension_semantics<arbitrary>], iteration_bounds = array<i64: 2, 1>, scalar_prefetch = 0 : i64, scratch_operands = 2 : i64, tpu.core_type = #tpu.core_type<tc>, window_params = [{transform_indices = @transform_0, window_bounds = array<i64: 8, 128>}, {transform_indices = @transform_1, window_bounds = array<i64: 8, 4>}, {transform_indices = @transform_2, window_bounds = array<i64: 8, 4>}, {transform_indices = @transform_3, window_bounds = array<i64: 1, 1, 1>}, {transform_indices = @transform_4, window_bounds = array<i64: 1, 1, 1>}]} {
    %c0_i32 = arith.constant 0 : i32
    %0 = arith.cmpi eq, %arg1, %c0_i32 : i32
    %1 = arith.extui %0 : i1 to i32
    %c0_i32_0 = arith.constant 0 : i32
    %2 = arith.cmpi ne, %1, %c0_i32_0 : i32
    scf.if %2 {
      %cst_22 = arith.constant 0.000000e+00 : f32
      %70 = vector.broadcast %cst_22 : f32 to vector<8x128xf32>
      %c0_23 = arith.constant 0 : index
      %c0_24 = arith.constant 0 : index
      %71 = vector.load %arg7[%c0_23, %c0_24] : memref<8x128xf32, #tpu.memory_space<vmem>>, vector<8x128xf32>
      tpu.vector_store %arg7[%c0_23, %c0_24], %70 {strides = array<i32>} : memref<8x128xf32, #tpu.memory_space<vmem>>, vector<8x128xf32>,
      %cst_25 = arith.constant 0.000000e+00 : f32
      %72 = vector.broadcast %cst_25 : f32 to vector<8x4xf32>
      %c0_26 = arith.constant 0 : index
      %c0_27 = arith.constant 0 : index
      %73 = vector.load %arg8[%c0_26, %c0_27] : memref<8x4xf32, #tpu.memory_space<vmem>>, vector<8x4xf32>
      tpu.vector_store %arg8[%c0_26, %c0_27], %72 {strides = array<i32>} : memref<8x4xf32, #tpu.memory_space<vmem>>, vector<8x4xf32>,
    } else {
    }
    %c1_i32 = arith.constant 1 : i32
    %3 = arith.muli %arg0, %c1_i32 : i32
    %4 = arith.addi %3, %arg1 : i32
    %c8_i32 = arith.constant 8 : i32
    %5 = arith.muli %4, %c8_i32 : i32
    %6 = tpu.iota {dimensions = array<i32: 0>} : vector<8x1xi32>
    %7 = vector.broadcast %5 : i32 to vector<8x1xi32>
    %8 = arith.addi %7, %6 : vector<8x1xi32>
    %c4_i32 = arith.constant 4 : i32
    %9 = vector.broadcast %c4_i32 : i32 to vector<8x1xi32>
    %10 = arith.cmpi slt, %8, %9 : vector<8x1xi32>
    %c0 = arith.constant 0 : index
    %c0_1 = arith.constant 0 : index
    %11 = vector.load %arg2[%c0, %c0_1] : memref<8x128xf32, #tpu.memory_space<vmem>>, vector<8x128xf32>
    %cst = arith.constant 0.000000e+00 : f32
    %12 = vector.shape_cast %10 : vector<8x1xi1> to vector<8x1xi1>
    %13 = vector.broadcast %12 : vector<8x1xi1> to vector<8x128xi1>
    %14 = vector.broadcast %cst : f32 to vector<8x128xf32>
    %15 = arith.select %13, %11, %14 : vector<8x128xi1>, vector<8x128xf32>
    %c0_2 = arith.constant 0 : index
    %c0_3 = arith.constant 0 : index
    %16 = vector.load %arg4[%c0_2, %c0_3] : memref<8x4xf32, #tpu.memory_space<vmem>>, vector<8x4xf32>
    %cst_4 = arith.constant 0.000000e+00 : f32
    %17 = vector.shape_cast %10 : vector<8x1xi1> to vector<8x1xi1>
    %18 = vector.broadcast %17 : vector<8x1xi1> to vector<8x4xi1>
    %19 = vector.broadcast %cst_4 : f32 to vector<8x4xf32>
    %20 = arith.select %18, %16, %19 : vector<8x4xi1>, vector<8x4xf32>
    %c0_5 = arith.constant 0 : index
    %c0_6 = arith.constant 0 : index
    %21 = vector.load %arg3[%c0_5, %c0_6] : memref<8x4xi32, #tpu.memory_space<vmem>>, vector<8x4xi32>
    %22 = tpu.iota {dimensions = array<i32: 1>} : vector<8x128xi32>
    %cst_7 = arith.constant 0.000000e+00 : f32
    %23 = vector.broadcast %cst_7 : f32 to vector<8x128xf32>
    %24 = vector.extract_strided_slice %21 {offsets = [0, 0], sizes = [8, 1], strides = [1, 1]} : vector<8x4xi32> to vector<8x1xi32>
    %25 = vector.broadcast %24 : vector<8x1xi32> to vector<8x128xi32>
    %26 = arith.cmpi eq, %22, %25 : vector<8x128xi32>
    %27 = vector.extract_strided_slice %20 {offsets = [0, 0], sizes = [8, 1], strides = [1, 1]} : vector<8x4xf32> to vector<8x1xf32>
    %cst_8 = arith.constant 0.000000e+00 : f32
    %28 = vector.shape_cast %27 : vector<8x1xf32> to vector<8x1xf32>
    %29 = vector.broadcast %28 : vector<8x1xf32> to vector<8x128xf32>
    %30 = vector.broadcast %cst_8 : f32 to vector<8x128xf32>
    %31 = arith.select %26, %29, %30 : vector<8x128xi1>, vector<8x128xf32>
    %32 = arith.addf %23, %31 : vector<8x128xf32>
    %33 = vector.extract_strided_slice %21 {offsets = [0, 1], sizes = [8, 1], strides = [1, 1]} : vector<8x4xi32> to vector<8x1xi32>
    %34 = vector.broadcast %33 : vector<8x1xi32> to vector<8x128xi32>
    %35 = arith.cmpi eq, %22, %34 : vector<8x128xi32>
    %36 = vector.extract_strided_slice %20 {offsets = [0, 1], sizes = [8, 1], strides = [1, 1]} : vector<8x4xf32> to vector<8x1xf32>
    %cst_9 = arith.constant 0.000000e+00 : f32
    %37 = vector.shape_cast %36 : vector<8x1xf32> to vector<8x1xf32>
    %38 = vector.broadcast %37 : vector<8x1xf32> to vector<8x128xf32>
    %39 = vector.broadcast %cst_9 : f32 to vector<8x128xf32>
    %40 = arith.select %35, %38, %39 : vector<8x128xi1>, vector<8x128xf32>
    %41 = arith.addf %32, %40 : vector<8x128xf32>
    %42 = vector.extract_strided_slice %21 {offsets = [0, 2], sizes = [8, 1], strides = [1, 1]} : vector<8x4xi32> to vector<8x1xi32>
    %43 = vector.broadcast %42 : vector<8x1xi32> to vector<8x128xi32>
    %44 = arith.cmpi eq, %22, %43 : vector<8x128xi32>
    %45 = vector.extract_strided_slice %20 {offsets = [0, 2], sizes = [8, 1], strides = [1, 1]} : vector<8x4xf32> to vector<8x1xf32>
    %cst_10 = arith.constant 0.000000e+00 : f32
    %46 = vector.shape_cast %45 : vector<8x1xf32> to vector<8x1xf32>
    %47 = vector.broadcast %46 : vector<8x1xf32> to vector<8x128xf32>
    %48 = vector.broadcast %cst_10 : f32 to vector<8x128xf32>
    %49 = arith.select %44, %47, %48 : vector<8x128xi1>, vector<8x128xf32>
    %50 = arith.addf %41, %49 : vector<8x128xf32>
    %51 = vector.extract_strided_slice %21 {offsets = [0, 3], sizes = [8, 1], strides = [1, 1]} : vector<8x4xi32> to vector<8x1xi32>
    %52 = vector.broadcast %51 : vector<8x1xi32> to vector<8x128xi32>
    %53 = arith.cmpi eq, %22, %52 : vector<8x128xi32>
    %54 = vector.extract_strided_slice %20 {offsets = [0, 3], sizes = [8, 1], strides = [1, 1]} : vector<8x4xf32> to vector<8x1xf32>
    %cst_11 = arith.constant 0.000000e+00 : f32
    %55 = vector.shape_cast %54 : vector<8x1xf32> to vector<8x1xf32>
    %56 = vector.broadcast %55 : vector<8x1xf32> to vector<8x128xf32>
    %57 = vector.broadcast %cst_11 : f32 to vector<8x128xf32>
    %58 = arith.select %53, %56, %57 : vector<8x128xi1>, vector<8x128xf32>
    %59 = arith.addf %50, %58 : vector<8x128xf32>
    %c0_12 = arith.constant 0 : index
    %c0_13 = arith.constant 0 : index
    %60 = vector.load %arg7[%c0_12, %c0_13] : memref<8x128xf32, #tpu.memory_space<vmem>>, vector<8x128xf32>
    %61 = arith.mulf %15, %59 : vector<8x128xf32>
    %62 = arith.addf %60, %61 : vector<8x128xf32>
    %c0_14 = arith.constant 0 : index
    %c0_15 = arith.constant 0 : index
    %63 = vector.load %arg7[%c0_14, %c0_15] : memref<8x128xf32, #tpu.memory_space<vmem>>, vector<8x128xf32>
    tpu.vector_store %arg7[%c0_14, %c0_15], %62 {strides = array<i32>} : memref<8x128xf32, #tpu.memory_space<vmem>>, vector<8x128xf32>,
    %c0_16 = arith.constant 0 : index
    %c0_17 = arith.constant 0 : index
    %64 = vector.load %arg8[%c0_16, %c0_17] : memref<8x4xf32, #tpu.memory_space<vmem>>, vector<8x4xf32>
    %65 = arith.addf %64, %20 : vector<8x4xf32>
    %c0_18 = arith.constant 0 : index
    %c0_19 = arith.constant 0 : index
    %66 = vector.load %arg8[%c0_18, %c0_19] : memref<8x4xf32, #tpu.memory_space<vmem>>, vector<8x4xf32>
    tpu.vector_store %arg8[%c0_18, %c0_19], %65 {strides = array<i32>} : memref<8x4xf32, #tpu.memory_space<vmem>>, vector<8x4xf32>,
    %c0_i32_20 = arith.constant 0 : i32
    %67 = arith.cmpi eq, %arg1, %c0_i32_20 : i32
    %68 = arith.extui %67 : i1 to i32
    %c0_i32_21 = arith.constant 0 : i32
    %69 = arith.cmpi ne, %68, %c0_i32_21 : i32
    scf.if %69 {
      %c0_22 = arith.constant 0 : index
      %c0_23 = arith.constant 0 : index
      %70 = vector.load %arg7[%c0_22, %c0_23] : memref<8x128xf32, #tpu.memory_space<vmem>>, vector<8x128xf32>
      %71 = vector.shape_cast %70 : vector<8x128xf32> to vector<1x8x128xf32>
      %cst_24 = arith.constant dense<0.000000e+00> : vector<1xf32>
      %72 = vector.multi_reduction <add>, %71, %cst_24 [1, 2] : vector<1x8x128xf32> to vector<1xf32>
      %73 = vector.shape_cast %72 : vector<1xf32> to vector<1x1x1xf32>
      %74 = vector.extract %73[0, 0, 0] : f32 from vector<1x1x1xf32>
      %75 = vector.broadcast %74 : f32 to vector<1x1x1xf32>
      %c0_25 = arith.constant 0 : index
      %c0_26 = arith.constant 0 : index
      %c0_27 = arith.constant 0 : index
      %76 = vector.load %arg5[%c0_25, %c0_26, %c0_27] : memref<1x1x1xf32, #tpu.memory_space<vmem>>, vector<1x1x1xf32>
      tpu.vector_store %arg5[%c0_25, %c0_26, %c0_27], %75 {strides = array<i32>} : memref<1x1x1xf32, #tpu.memory_space<vmem>>, vector<1x1x1xf32>,
      %c0_28 = arith.constant 0 : index
      %c0_29 = arith.constant 0 : index
      %77 = vector.load %arg8[%c0_28, %c0_29] : memref<8x4xf32, #tpu.memory_space<vmem>>, vector<8x4xf32>
      %78 = vector.shape_cast %77 : vector<8x4xf32> to vector<1x8x4xf32>
      %cst_30 = arith.constant dense<0.000000e+00> : vector<1xf32>
      %79 = vector.multi_reduction <add>, %78, %cst_30 [1, 2] : vector<1x8x4xf32> to vector<1xf32>
      %80 = vector.shape_cast %79 : vector<1xf32> to vector<1x1x1xf32>
      %81 = vector.extract %80[0, 0, 0] : f32 from vector<1x1x1xf32>
      %82 = vector.broadcast %81 : f32 to vector<1x1x1xf32>
      %c0_31 = arith.constant 0 : index
      %c0_32 = arith.constant 0 : index
      %c0_33 = arith.constant 0 : index
      %83 = vector.load %arg6[%c0_31, %c0_32, %c0_33] : memref<1x1x1xf32, #tpu.memory_space<vmem>>, vector<1x1x1xf32>
      tpu.vector_store %arg6[%c0_31, %c0_32, %c0_33], %82 {strides = array<i32>} : memref<1x1x1xf32, #tpu.memory_space<vmem>>, vector<1x1x1xf32>,
    } else {
    }
    return
  }
  func.func @transform_0(%arg0: i32, %arg1: i32) -> (i32, i32) {
    %c1_i32 = arith.constant 1 : i32
    %0 = arith.muli %arg0, %c1_i32 : i32
    %1 = arith.addi %0, %arg1 : i32
    %c0_i32 = arith.constant 0 : i32
    %2 = arith.minsi %1, %c0_i32 : i32
    %c0_i32_0 = arith.constant 0 : i32
    %c0_i32_1 = arith.constant 0 : i32
    return %2, %c0_i32_0 : i32, i32
  }
  func.func @transform_1(%arg0: i32, %arg1: i32) -> (i32, i32) {
    %c1_i32 = arith.constant 1 : i32
    %0 = arith.muli %arg0, %c1_i32 : i32
    %1 = arith.addi %0, %arg1 : i32
    %c0_i32 = arith.constant 0 : i32
    %2 = arith.minsi %1, %c0_i32 : i32
    %c0_i32_0 = arith.constant 0 : i32
    %c0_i32_1 = arith.constant 0 : i32
    return %2, %c0_i32_0 : i32, i32
  }
  func.func @transform_2(%arg0: i32, %arg1: i32) -> (i32, i32) {
    %c1_i32 = arith.constant 1 : i32
    %0 = arith.muli %arg0, %c1_i32 : i32
    %1 = arith.addi %0, %arg1 : i32
    %c0_i32 = arith.constant 0 : i32
    %2 = arith.minsi %1, %c0_i32 : i32
    %c0_i32_0 = arith.constant 0 : i32
    %c0_i32_1 = arith.constant 0 : i32
    return %2, %c0_i32_0 : i32, i32
  }
  func.func @transform_3(%arg0: i32, %arg1: i32) -> (i32, i32, i32) {
    %c0_i32 = arith.constant 0 : i32
    %c0_i32_0 = arith.constant 0 : i32
    %c0_i32_1 = arith.constant 0 : i32
    return %arg0, %c0_i32, %c0_i32_0 : i32, i32, i32
  }
  func.func @transform_4(%arg0: i32, %arg1: i32) -> (i32, i32, i32) {
    %c0_i32 = arith.constant 0 : i32
    %c0_i32_0 = arith.constant 0 : i32
    %c0_i32_1 = arith.constant 0 : i32
    return %arg0, %c0_i32, %c0_i32_0 : i32, i32, i32
  }
}

</mosaic_0001>

<bundles_post_ra>
// kernel: masked_nll_loss.1
= control target key start
LH: loop header
LB: loop body
LE: loop exit
PB: predicated region body
PF: predicated region fallthrough
CT: control target
= control target key end

     0   :  { %s668_s15 = smov 0   ;;  %s670_s16 = smov 0   ;;  %s727_s0 = inlined_call_operand.vmem [shape: f32[4,128], index: 0, kind: input, shape index: {}]   ;;  %s728_s1 = inlined_call_operand.vmem [shape: s32[4,4], index: 1, kind: input, shape index: {}]   ;;  %s729_s2 = inlined_call_operand.vmem [shape: f32[4,4], index: 2, kind: input, shape index: {}]   ;;  %s730_s3 = inlined_call_operand.vmem [shape: f32[2,1,1], index: 3, kind: output, shape index: {0}]   ;;  %s731_s4 = inlined_call_operand.vmem [shape: f32[2,1,1], index: 4, kind: output, shape index: {1}]  }
   0x1   :  { %s672_s17 = smov 0  }
   0x2 LB: > { %s27_s18 = sadd.s32 1, %s632_s16  ;;  %p563_p0 = scmp.ge.s32.totalorder %s636_s17, 1  ;;  %s636_s17 = sphi %s672_s17, %s15_s17   ;;  %s632_s16 = sphi %s670_s16, %s733_s16   ;;  %s628_s15 = sphi %s668_s15, %s732_s15  }
   0x3   : > { %p29_p1 = scmp.ge.s32.totalorder %s27_s18, 2  ;;  %p248_p2 = scmp.lt.s32.totalorder %s636_s17, 3 }
   0x5   : > { %s735_s18 = smov (%p29_p1, %s27_s18), 0  ;;  %p249_p3 = pnand %p563_p0, %p248_p2 }
   0x6   : > { %p301_p4 = scmp.lt.s32.totalorder (!%p249_p3), %s628_s15, 0  ;;  %v363_v0 = vlaneseq (!%p249_p3)  ;;  %v638_v1 = vmov (!%p249_p3), 2   ;;  %v639_v2 = vmov (!%p249_p3), 0   ;;  %s570_s19 = sshll.u32 (!%p249_p3), %s628_s15, 3  ;;  %vm359_vm0 = vcmask (!%p249_p3), 31744  }
   0x7   : > { %252 = sbr.rel (%p249_p3) target bundleno = 382 (0x17e), region = 32  ;;  %608 = vset.pattern.permute.xlu1 (!%p249_p3), %v638_v1  ;;  %606 = vset.pattern.permute.xlu0 (!%p249_p3), %v639_v2  ;;  %v365_v4 = vstv (!%p249_p3), %s570_s19  ;;  %v640_v8 = vmov (!%p249_p3), 0.0   ;;  %v641_v10 = vmov (!%p249_p3), 1   ;;  %v642_v13 = vmov (!%p249_p3), 3   ;;  %p348_p6 = scmp.lt.s32.totalorder (!%p249_p3), %s628_s15, 1 }
   0x8   : > { %v364_v3 = vshrl.u32 (!%p249_p3), %v363_v0, 7  ;;  %360 = vst.msk [vmem:[#allocation3] sm:$0xff] (!%p249_p3), %vm359_vm0, %v640_v8  ;;  %v376_v21 = vand.u32 (!%p249_p3), 127, %v363_v0  ;;  %vm440_vm6 = vcmask (!%p249_p3), 0  }
   0xa   : > { %v366_v5 = vadd.s32 (!%p249_p3), %v365_v4, %v364_v3 }
   0xc   : > { %vm367_vm1 = vcmp.lt.s32.totalorder (!%p249_p3), %v366_v5, 4 }
   0xe   : > { %s302_s20 = scalar_select %p301_p4, %s628_s15, 0 }
   0xf   : > { %v422_v11 = vld [vmem:[#allocation3] sm:$0xff]  ;;  %s739_s15 = smov (!%p348_p6, %s628_s15), 1 }
  0x10   : > { %s564_s21 = sshll.u32 %s302_s20, 1  ;;  %s350_s8 = scalar_lea.vmem %s730_s3, %s739_s15 }
  0x11   : > { %p306_p5 = scmp.lt.s32.totalorder %s564_s21, 0  ;;  %s353_s12 = scalar_lea.vmem %s731_s4, %s739_s15 }
  0x13   : > { %s737_s21 = smov (!%p306_p5, %s564_s21), 0 }
  0x14   : > { %s691_s22 = sshll.u32 %s737_s21, 2 }
  0x15   : > { %s325_s25 = scalar_lea.vmem %s728_s1, %s691_s22  ;;  %s341_s28 = scalar_lea.vmem %s729_s2, %s691_s22 }
  0x16   : > { %v374_v6 = vld [vmem:[%s325_s25] sm:$0xff]  ;;  %s309_s5 = scalar_lea.vmem %s727_s0, %s691_s22 }
  0x17   : > { %v372_v7 = vld [vmem:[%s341_s28] sm:$0xff]  ;;  %399 = vperm.xlu1 %608, %v374_v6   ;;  %378 = vperm.xlu0 %606, %v374_v6  }
  0x18   : > { %v373_v9 = vsel %vm367_vm1, %v372_v7, 0.0  ;;  %v368_v14 = vld [vmem:[%s309_s5] sm:$0xff] }
  0x19   : > { %v423_v12 = vadd.f32 %v422_v11, %v373_v9  ;;  %v371_v15 = vsel %vm367_vm1, %v368_v14, 0.0 }
  0x1b   : > { %609 = vset.pattern.permute.xlu1 %v639_v2  ;;  %607 = vset.pattern.permute.xlu0 %v641_v10  ;;  %425 = vst.msk [vmem:[#allocation3] sm:$0xff] %vm359_vm0, %v423_v12 }
  0x1c   : > { %383 = vperm.xlu1 %609, %v373_v9   ;;  %389 = vperm.xlu0 %607, %v374_v6  }
  0x20   : > { %610 = vset.pattern.permute.xlu1 %v641_v10  ;;  %611 = vset.pattern.permute.xlu0 %v638_v1 }
  0x21   : > { %393 = vperm.xlu1 %610, %v373_v9   ;;  %403 = vperm.xlu0 %611, %v373_v9  }
  0x22   : > { %v442_v16 = vld [vmem:[#allocation3] sm:$0xff] }
  0x23   : > { %v443_v17 = vsel %vm359_vm0, %v442_v16, 0.0 }
  0x25   : > { %612 = vset.pattern.permute.xlu1 %v642_v13  ;;  %613 = vset.pattern.permute.xlu0 %v642_v13 }
  0x26   : > { %409 = vperm.xlu1 %612, %v374_v6  }
  0x2a   : > { %413 = vperm.xlu1 %612, %v373_v9  }
  0x4e   : > { %444 = vadd.xlane.f32.xlu1 %v443_v17 }
  0x96   : > { %v400_v18 = vpop.permute.xlu1 %399  ;;  %v379_v19 = vpop.permute.xlu0 %378 }
  0x97   : > { %vm380_vm3 = vcmp.eq.s32.totalorder %v376_v21, %v379_v19  ;;  %vm401_vm4 = vcmp.eq.s32.totalorder %v376_v21, %v400_v18 }
  0x9b   : > { %v384_v20 = vpop.permute.xlu1 %383  ;;  %v390_v22 = vpop.permute.xlu0 %389 }
  0x9c   : > { %vm391_vm2 = vcmp.eq.s32.totalorder %v376_v21, %v390_v22  ;;  %v386_v25 = vsel %vm380_vm3, %v384_v20, 0.0 }
  0xa0   : > { %v394_v23 = vpop.permute.xlu1 %393  ;;  %v404_v27 = vpop.permute.xlu0 %403 }
  0xa1   : > { %v396_v24 = vsel %vm391_vm2, %v394_v23, 0.0  ;;  %v406_v29 = vsel %vm401_vm4, %v404_v27, 0.0 }
  0xa2   : > { %v397_v26 = vadd.f32 %v396_v24, %v386_v25 }
  0xa4   : > { %v407_v30 = vadd.f32 %v406_v29, %v397_v26 }
  0xa5   : > { %v410_v28 = vpop.permute.xlu1 %409 }
  0xa6   : > { %vm411_vm5 = vcmp.eq.s32.totalorder %v376_v21, %v410_v28 }
  0xa9   : > { %v414_v31 = vpop.permute.xlu1 %413 }
  0xaa   : > { %v416_v32 = vsel %vm411_vm5, %v414_v31, 0.0 }
  0xab   : > { %v417_v33 = vadd.f32 %v416_v32, %v407_v30 }
  0xad   : > { %v419_v34 = vmul.f32 %v417_v33, %v371_v15 }
  0xaf   : > { %430 = vadd.xlane.f32.xlu0 %v419_v34 }
  0xdb   : > { %v445_v35 = vpop.xlane.xlu1 %444 }
  0xdc   : > { %v446_v36 = vrot.slane %v445_v35, 4 }
  0xde   : > { %v447_v37 = vadd.f32 %v446_v36, %v445_v35 }
  0xe0   : > { %v448_v38 = vrot.slane %v447_v37, 2 }
  0xe2   : > { %v449_v42 = vadd.f32 %v448_v38, %v447_v37 }
  0xe4   : > { %v450_v45 = vrot.slane %v449_v42, 1 }
  0xe6   : > { %v451_v48 = vadd.f32 %v450_v45, %v449_v42 }
 0x13c   : > { %v431_v39 = vpop.xlane.xlu0 %430 }
 0x13d   : > { %v432_v40 = vrot.slane %v431_v39, 4 }
 0x13f   : > { %v433_v41 = vadd.f32 %v432_v40, %v431_v39 }
 0x141   : > { %v434_v43 = vrot.slane %v433_v41, 2 }
 0x143   : > { %v435_v44 = vadd.f32 %v434_v43, %v433_v41 }
 0x145   : > { %v436_v46 = vrot.slane %v435_v44, 1 }
 0x147   : > { %v437_v47 = vadd.f32 %v436_v46, %v435_v44 }
 0x149   : > { %573 = vpush %v437_v47 }
 0x14a   : > { %575 = vpush %v451_v48 }
 0x17a   : > { %s574_s9 = spop %573 }
 0x17b   : > { %v439_v49 = vstv %s574_s9  ;;  %s576_s13 = spop %575 }
 0x17c   : > { %441 = vst.msk [vmem:[%s350_s8] sm:$0x1] %vm440_vm6, %v439_v49  ;;  %v453_v50 = vstv %s576_s13 }
 0x17d   : > { %454 = vst.msk [vmem:[%s353_s12] sm:$0x1] %vm440_vm6, %v453_v50 }
 0x17e PF: > { %s15_s17 = sadd.s32 1, %s636_s17   ;;  %s732_s15 = smov %s632_s16 }
 0x17f   : > { %p12_p7 = scmp.ge.s32.totalorder %s15_s17, 4   ;;  %s733_s16 = smov %s735_s18 }
 0x181   :  { %14 = sbr.rel (!%p12_p7) target bundleno = 2 (0x2), region = 88 }

</bundles_post_ra>
